<compile_context>
chip_gen: v5e
topology: v5e:2x2
jax: 0.10.0
libtpu: 0.0.40
codegen_flags: <defaults>
</compile_context>

<pallas_src>
import math

import jax
import jax.numpy as jnp
from jax.experimental import pallas as pl
from jax.experimental.pallas import tpu as pltpu


def _pe_add_kernel(rowpos_ref, poff_ref, freq_ref, odd_ref, x_ref, o_ref):
    # rowpos: (rows, 1) base position of each flattened row (r * g), exact f32 ints
    # poff:   (1, L)    per-lane position offset within a folded row (lane // D)
    # freq:   (1, L)    per-lane angular frequency w_{feat//2}
    # odd:    (1, L)    1.0 where the feature index is odd (cos lanes), else 0.0
    # x/o:    (rows, L) tile of the flattened (B, R, L) view (batch dim squeezed)
    pos = rowpos_ref[...] + poff_ref[...]            # exact integer-valued f32
    ang = pos * freq_ref[...]                        # single rounding == torch position*div_term
    pe = jnp.where(odd_ref[...] != 0.0, jnp.cos(ang), jnp.sin(ang))
    o_ref[...] = (x_ref[...].astype(jnp.float32) + pe).astype(o_ref.dtype)


def _default_block_bytes():
    # Generation-aware tile target: bigger tiles on 128 MiB VMEM chips (v5e/v6e),
    # conservative on v7x (64 MiB VMEM / TC).  Falls back to the safe value.
    try:
        kind = jax.devices()[0].device_kind.lower()
    except Exception:
        return 2 << 20
    if "v5" in kind or "v6" in kind:
        return 6 << 20
    return 2 << 20


def _pick_rows(num_rows, lane_width, itemsize, target_block_bytes):
    """Fixed, sublane-aligned row-tile size (no divisor requirement on num_rows)."""
    sublane = {1: 32, 2: 16}.get(itemsize, 8)
    cap = max(1, target_block_bytes // max(1, lane_width * itemsize))
    rows = (cap // sublane) * sublane
    if rows == 0:
        rows = sublane
    if rows >= num_rows:
        return num_rows              # full extent is always a legal block dim
    return rows


def sinusoidal_positional_encoding_add(x, *, max_len=20000, target_block_bytes=None):
    """x: (B, S, D). Returns x + pe[:, :S, :] (same semantics as the torch module)."""
    B, S, D = x.shape
    assert S <= max_len, "sequence length exceeds max_len"
    assert D % 2 == 0, "d_model must be even (as in the torch module)"
    if target_block_bytes is None:
        target_block_bytes = _default_block_bytes()

    # torch adds a float32 PE buffer -> result dtype follows promotion rules.
    out_dtype = jnp.result_type(x.dtype, jnp.float32)

    # Fold g consecutive positions into the lane axis so the last block dim % 128 == 0.
    g = 1 if D % 128 == 0 else math.lcm(D, 128) // D
    S_pad = ((S + g - 1) // g) * g
    xp = x if S_pad == S else jnp.pad(x, ((0, 0), (0, S_pad - S), (0, 0)))
    R = S_pad // g
    L = g * D
    x_flat = xp.reshape(B, R, L)

    itemsize = x.dtype.itemsize
    rows = _pick_rows(R, L, itemsize, target_block_bytes)
    num_row_blocks = pl.cdiv(R, rows)

    # Per-lane tables for the flattened layout (feature index j = lane % D).
    lane = jnp.arange(L, dtype=jnp.int32)
    feat = lane % D
    poff = (lane // D).astype(jnp.float32).reshape(1, L)
    freq = jnp.exp(
        (feat - (feat % 2)).astype(jnp.float32) * (-math.log(10000.0) / D)
    ).reshape(1, L)
    odd = (feat % 2).astype(jnp.float32).reshape(1, L)
    rowpos = (jnp.arange(R, dtype=jnp.float32) * float(g)).reshape(R, 1)

    in_block_bytes = rows * L * itemsize
    out_block_bytes = rows * L * jnp.dtype(out_dtype).itemsize
    # 2x double-buffered in + 2x out + small tables + headroom, capped for v7x.
    vmem_limit = int(
        min(48 << 20, max(16 << 20, 2 * (in_block_bytes + out_block_bytes) + (8 << 20)))
    )

    tbl_spec = pl.BlockSpec((1, L), lambda s, b: (0, 0))
    xio_spec = pl.BlockSpec((None, rows, L), lambda s, b: (b, s, 0))  # batch squeezed

    out = pl.pallas_call(
        _pe_add_kernel,
        out_shape=jax.ShapeDtypeStruct((B, R, L), out_dtype),
        grid=(num_row_blocks, B),
        in_specs=[
            pl.BlockSpec((rows, 1), lambda s, b: (s, 0)),   # rowpos
            tbl_spec,                                       # poff
            tbl_spec,                                       # freq
            tbl_spec,                                       # odd
            xio_spec,                                       # x
        ],
        out_specs=xio_spec,
        compiler_params=pltpu.CompilerParams(
            dimension_semantics=("parallel", "parallel"),
            vmem_limit_bytes=vmem_limit,
        ),
    )(rowpos, poff, freq, odd, x_flat)

    return out.reshape(B, S_pad, D)[:, :S, :]


def _reference_pe(seq_len, d_model):
    # Pure-JAX reference mirroring the torch __init__ exactly (sliced to seq_len).
    position = jnp.arange(seq_len, dtype=jnp.float32)[:, None]
    div_term = jnp.exp(
        jnp.arange(0, d_model, 2, dtype=jnp.float32) * (-math.log(10000.0) / d_model)
    )
    pe = jnp.zeros((seq_len, d_model), dtype=jnp.float32)
    pe = pe.at[:, 0::2].set(jnp.sin(position * div_term))
    pe = pe.at[:, 1::2].set(jnp.cos(position * div_term))
    return pe[None]  # (1, seq_len, d_model)


if __name__ == "__main__":
    key = jax.random.PRNGKey(0)

    # Lane-folding path (D=64 -> g=2), D%128==0 path, and the S%g!=0 padding path.
    for (B, S, D) in [(2, 16, 64), (2, 8, 128), (2, 13, 64)]:
        key, sub = jax.random.split(key)
        x = jax.random.normal(sub, (B, S, D), dtype=jnp.float32)

        out = jax.block_until_ready(sinusoidal_positional_encoding_add(x))

        ref = x + _reference_pe(S, D)
        assert out.shape == ref.shape, (out.shape, ref.shape)
        err = float(jnp.max(jnp.abs(out - ref)))
        assert err < 1e-5, f"max abs err {err} for shape {(B, S, D)}"

    print("KERNEL_OK")
</pallas_src>

<mosaic_0001>
module attributes {stable_mosaic.version = 11 : i64} {
  func.func @_pe_add_kernel(%arg0: i32, %arg1: i32, %arg2: memref<8x1xf32, #tpu.memory_space<vmem>>, %arg3: memref<1x128xf32, #tpu.memory_space<vmem>>, %arg4: memref<1x128xf32, #tpu.memory_space<vmem>>, %arg5: memref<1x128xf32, #tpu.memory_space<vmem>>, %arg6: memref<1x8x128xf32, #tpu.memory_space<vmem>>, %arg7: memref<1x8x128xf32, #tpu.memory_space<vmem>>) attributes {dimension_semantics = [#tpu.dimension_semantics<parallel>, #tpu.dimension_semantics<parallel>], iteration_bounds = array<i64: 1, 2>, scalar_prefetch = 0 : i64, scratch_operands = 0 : i64, tpu.core_type = #tpu.core_type<tc>, window_params = [{transform_indices = @transform_0, window_bounds = array<i64: 8, 1>}, {pipeline_mode = #tpu.pipeline_mode<synchronous>, transform_indices = @transform_1, window_bounds = array<i64: 1, 128>}, {pipeline_mode = #tpu.pipeline_mode<synchronous>, transform_indices = @transform_2, window_bounds = array<i64: 1, 128>}, {pipeline_mode = #tpu.pipeline_mode<synchronous>, transform_indices = @transform_3, window_bounds = array<i64: 1, 128>}, {transform_indices = @transform_4, window_bounds = array<i64: 1, 8, 128>}, {transform_indices = @transform_5, window_bounds = array<i64: 1, 8, 128>}]} {
    %c0 = arith.constant 0 : index
    %c0_0 = arith.constant 0 : index
    %0 = vector.load %arg2[%c0, %c0_0] : memref<8x1xf32, #tpu.memory_space<vmem>>, vector<8x1xf32>
    %c0_1 = arith.constant 0 : index
    %c0_2 = arith.constant 0 : index
    %1 = vector.load %arg3[%c0_1, %c0_2] : memref<1x128xf32, #tpu.memory_space<vmem>>, vector<1x128xf32>
    %2 = vector.broadcast %0 : vector<8x1xf32> to vector<8x128xf32>
    %3 = vector.broadcast %1 : vector<1x128xf32> to vector<8x128xf32>
    %4 = arith.addf %2, %3 : vector<8x128xf32>
    %c0_3 = arith.constant 0 : index
    %c0_4 = arith.constant 0 : index
    %5 = vector.load %arg4[%c0_3, %c0_4] : memref<1x128xf32, #tpu.memory_space<vmem>>, vector<1x128xf32>
    %6 = vector.broadcast %5 : vector<1x128xf32> to vector<8x128xf32>
    %7 = arith.mulf %4, %6 : vector<8x128xf32>
    %c0_5 = arith.constant 0 : index
    %c0_6 = arith.constant 0 : index
    %8 = vector.load %arg5[%c0_5, %c0_6] : memref<1x128xf32, #tpu.memory_space<vmem>>, vector<1x128xf32>
    %cst = arith.constant 0.000000e+00 : f32
    %9 = vector.broadcast %cst : f32 to vector<1x128xf32>
    %10 = arith.cmpf one, %8, %9 : vector<1x128xf32>
    %11 = math.cos %7 : vector<8x128xf32>
    %12 = math.sin %7 : vector<8x128xf32>
    %13 = vector.shape_cast %10 : vector<1x128xi1> to vector<1x128xi1>
    %14 = vector.broadcast %13 : vector<1x128xi1> to vector<8x128xi1>
    %15 = arith.select %14, %11, %12 : vector<8x128xi1>, vector<8x128xf32>
    %c0_7 = arith.constant 0 : index
    %c0_8 = arith.constant 0 : index
    %c0_9 = arith.constant 0 : index
    %16 = vector.load %arg6[%c0_7, %c0_8, %c0_9] : memref<1x8x128xf32, #tpu.memory_space<vmem>>, vector<1x8x128xf32>
    %17 = vector.shape_cast %16 : vector<1x8x128xf32> to vector<8x128xf32>
    %18 = arith.addf %17, %15 : vector<8x128xf32>
    %c0_10 = arith.constant 0 : index
    %c0_11 = arith.constant 0 : index
    %c0_12 = arith.constant 0 : index
    %19 = vector.load %arg7[%c0_10, %c0_11, %c0_12] : memref<1x8x128xf32, #tpu.memory_space<vmem>>, vector<1x8x128xf32>
    %20 = vector.shape_cast %19 : vector<1x8x128xf32> to vector<8x128xf32>
    %21 = vector.shape_cast %18 : vector<8x128xf32> to vector<1x8x128xf32>
    tpu.vector_store %arg7[%c0_10, %c0_11, %c0_12], %21 {strides = array<i32>} : memref<1x8x128xf32, #tpu.memory_space<vmem>>, vector<1x8x128xf32>,
    return
  }
  func.func @transform_0(%arg0: i32, %arg1: i32) -> (i32, i32) {
    %c0_i32 = arith.constant 0 : i32
    %c0_i32_0 = arith.constant 0 : i32
    return %arg0, %c0_i32 : i32, i32
  }
  func.func @transform_1(%arg0: i32, %arg1: i32) -> (i32, i32) {
    %c0_i32 = arith.constant 0 : i32
    %c0_i32_0 = arith.constant 0 : i32
    %c0_i32_1 = arith.constant 0 : i32
    return %c0_i32, %c0_i32_0 : i32, i32
  }
  func.func @transform_2(%arg0: i32, %arg1: i32) -> (i32, i32) {
    %c0_i32 = arith.constant 0 : i32
    %c0_i32_0 = arith.constant 0 : i32
    %c0_i32_1 = arith.constant 0 : i32
    return %c0_i32, %c0_i32_0 : i32, i32
  }
  func.func @transform_3(%arg0: i32, %arg1: i32) -> (i32, i32) {
    %c0_i32 = arith.constant 0 : i32
    %c0_i32_0 = arith.constant 0 : i32
    %c0_i32_1 = arith.constant 0 : i32
    return %c0_i32, %c0_i32_0 : i32, i32
  }
  func.func @transform_4(%arg0: i32, %arg1: i32) -> (i32, i32, i32) {
    %c0_i32 = arith.constant 0 : i32
    %c0_i32_0 = arith.constant 0 : i32
    return %arg1, %arg0, %c0_i32 : i32, i32, i32
  }
  func.func @transform_5(%arg0: i32, %arg1: i32) -> (i32, i32, i32) {
    %c0_i32 = arith.constant 0 : i32
    %c0_i32_0 = arith.constant 0 : i32
    return %arg1, %arg0, %c0_i32 : i32, i32, i32
  }
}

</mosaic_0001>

<bundles_post_ra>
// kernel: tpu_custom_call.1
= control target key start
LH: loop header
LB: loop body
LE: loop exit
PB: predicated region body
PF: predicated region fallthrough
CT: control target
= control target key end

     0   :  { %10 = vsyncpa [#allocation3], 0  ;;  %s1166_s0 = inlined_call_operand.vmem [shape: f32[8,1], index: 0, kind: input, shape index: {}]   ;;  %s1167_s1 = inlined_call_operand.vmem [shape: f32[1,128], index: 1, kind: input, shape index: {}]   ;;  %s1168_s2 = inlined_call_operand.vmem [shape: f32[1,128], index: 2, kind: input, shape index: {}]   ;;  %s1169_s3 = inlined_call_operand.vmem [shape: f32[1,128], index: 3, kind: input, shape index: {}]   ;;  %s1170_s4 = inlined_call_operand.hbm [shape: f32[2,8,128], index: 4, kind: input, shape index: {}]   ;;  %s1171_s5 = inlined_call_operand.hbm [shape: f32[2,8,128], index: 5, kind: output, shape index: {}]  }
   0x1   :  { %12 = vsyncpa [#allocation3 + $0x1], 0 }
   0x2   :  { %13 = vsyncpa [#allocation4], 0 }
   0x3   :  { %15 = vsyncpa [#allocation4 + $0x1], 0  ;;  %s965_s18 = smov 0   ;;  %s967_s19 = smov 0  }
   0x4   :  { %s969_s20 = smov 0   ;;  %s971_s21 = smov 0  }
   0x5   :  { %s973_s22 = smov 0   ;;  %s975_s23 = smov 0  }
   0x6 LB: > { %s722_s24 = sadd.s32 4294967295, %s926_s23   ;;  %s723_s25 = sadd.s32 4294967294, %s926_s23   ;;  %s926_s23 = sphi %s975_s23, %s21_s23   ;;  %s922_s22 = sphi %s973_s22, %s1180_s22   ;;  %s918_s21 = sphi %s971_s21, %s1179_s21   ;;  %s914_s20 = sphi %s969_s20, %s1178_s20   ;;  %s910_s19 = sphi %s967_s19, %s1177_s19   ;;  %s906_s18 = sphi %s965_s18, %s1176_s18  }
   0x7   : > { %s30_s26 = sadd.s32 1, %s922_s22  ;;  %s131_s27 = sadd.s32 1, %s914_s20 }
   0x8   : > { %p31_p0 = scmp.ge.s32.totalorder %s30_s26, 2  ;;  %p138_p1 = scmp.ne.s32.totalorder %s914_s20, %s910_s19 }
   0x9   : > { %p139_p2 = scmp.eq.s32.totalorder %s926_s23, 0  ;;  %p144_p3 = scmp.ne.s32.totalorder %s910_s19, %s906_s18 }
   0xa   : > { %s1182_s26 = smov (%p31_p0, %s30_s26), 0  ;;  %p145_p5 = scmp.eq.s32.totalorder %s722_s24, 0 }
   0xb   : > { %p1006_p4 = por %p139_p2, %p138_p1  ;;  %s126_s29 = ssub.s32 %s922_s22, %s1182_s26 }
   0xc   : > { %p170_p6 = scmp.eq.s32.totalorder %s722_s24, 1  ;;  %p129_p7 = scmp.eq.s32.totalorder %s126_s29, 0 }
   0xd   : > { %p1012_p8 = por %p145_p5, %p144_p3  ;;  %p176_p10 = scmp.eq.s32.totalorder %s723_s25, 1 }
   0xe   : > { %p1016_p9 = por %p170_p6, %p138_p1  ;;  %p726_p12 = scmp.ge.s32.totalorder %s926_s23, 2 }
   0xf   : > { %s1021_s7 = scalar_select %p129_p7, %s914_s20, %s131_s27  }
  0x10   : > { %p1023_p11 = por %p176_p10, %p144_p3  ;;  %p754_p13 = scmp.lt.s32.totalorder %s926_s23, 2 }
  0x11   : > { %s212_s9 = sand.u32 1, %s914_s20   ;;  %s728_s11 = sshll.u32 %s922_s22, 3 }
  0x12   : > { %s727_s10 = sshll.u32 %s212_s9, 3  ;;  %s221_s14 = scalar_lea.hbm %s1170_s4, %s728_s11 }
  0x13   : > { %s216_s15 = scalar_lea.vmem [#allocation2], %s727_s10  ;;  %s223_s17 = sshll.u32 %s221_s14, 4  ;;  %s224_s17 = int_to_ptr.hbm [resolvable:$true] %s223_s17 }
  0x14   : > { %s225_s16 = sshll.u32 %s216_s15, 4  ;;  %p747_p0 = pnand %p754_p13, %p1006_p4  ;;  %s226_s16 = int_to_ptr.vmem [resolvable:$true] %s225_s16 }
  0x15   : > { %p729_p1 = scmp.ge.s32.totalorder %s926_s23, 1  ;;  %p230_p2 = scmp.lt.s32.totalorder %s926_s23, 3 }
  0x16   : > { %s213_s24 = scalar_lea.sflag [#allocation3], %s212_s9 }
  0x17   : > { %749 = dma.hbm_to_vmem [thread:$0]  (!%p747_p0), %s224_s17, 128, %s226_s16, %s213_s24  }
  0x18   : > { %p231_p3 = pnand %p729_p1, %p230_p2 }
  0x19   : > { %s1039_s25 = sand.u32 (!%p231_p3), 1, %s910_s19  }
  0x1a   : > { %234 = sbr.rel (%p231_p3) target bundleno = 255 (0xff), region = 40  ;;  %s730_s27 = sshll.u32 (!%p231_p3), %s1039_s25, 3 }
  0x1b   : > { %s237_s29 = scalar_lea.sflag (!%p231_p3), [#allocation3], %s1039_s25  ;;  %s1045_s10 = scalar_lea.vmem (!%p231_p3), [#allocation2], %s730_s27 }
  0x1f   : > { %897 = dma.done.wait (%p1012_p8), %s237_s29, 128  }
  0x20   : > { %899 = vsyncadd (%p1012_p8), %s237_s29, 4294967168  ;;  %v928_v0 = vmov 0   ;;  %v276_v1 = vld [vmem:[%s1166_s0] sm:$0xff]  ;;  %v929_v18 = vmov 683565275   ;;  %s739_s16 = sshll.u32 %s918_s21, 3 }
  0x21   : > { %811 = vset.pattern.permute.xlu0 %v928_v0  ;;  %v812_v2 = vld [vmem:[%s1167_s1] ss:$0 sm:$0xff]  ;;  %v930_v20 = vmov 2475754826   ;;  %v931_v23 = vmov 2131351028   ;;  %s622_s29 = scalar_lea.hbm %s1171_s5, %s739_s16 }
  0x22   : > { %280 = vperm.xlu0 %811, %v276_v1   ;;  %v813_v3 = vld [vmem:[%s1168_s2] ss:$0 sm:$0xff]  ;;  %v932_v26 = vmov 2102212464   ;;  %v933_v29 = vmov 920167782  }
  0x23   : > { %v934_v32 = vmov 1326507024   ;;  %s271_s21 = scalar_lea.vmem [#allocation5], %s730_s27  ;;  %s626_s9 = sshll.u32 %s622_s29, 4  ;;  %s627_s9 = int_to_ptr.hbm [resolvable:$true] %s626_s9 }
  0x24   : > { %s624_s28 = sshll.u32 %s271_s21, 4  ;;  %s611_s11 = scalar_lea.sflag [#allocation4], %s1039_s25  ;;  %s625_s28 = int_to_ptr.vmem [resolvable:$true] %s624_s28 }
  0x25   : > { %s858_s12 = sshra.s32 %s627_s9, 4  ;;  %s864_s27 = scalar_lea.hbm %s1171_s5, 16  ;;  %s859_s12 = int_to_ptr.hbm [resolvable:$true] %s858_s12 }
  0x26   : > { %s860_s13 = scalar_lea.hbm %s859_s12, 8  ;;  %p865_p7 = scmp.lt.s32.totalorder %s859_s12, %s1171_s5 }
  0x27   : > { %p861_p4 = scmp.ne.s32.totalorder %s859_s12, %s860_s13  ;;  %p866_p8 = scmp.lt.s32.totalorder %s864_s27, %s860_s13 }
  0x29   : > { %p862_p5 = pnand %p861_p4, %p1016_p9  ;;  %p867_p10 = por %p866_p8, %p865_p7 }
  0x2b   : > { %p863_p6 = pneg %p862_p5 }
  0x2d   : > { %p868_p13 = pnand %p867_p10, %p863_p6 }
  0x94   : > { %v281_v4 = vpop.permute.xlu0 %280 }
  0x95   : > { %v286_v5 = vadd.f32 %v812_v2, %v281_v4 }
  0x97   : > { %v1061_v6 = vmul.f32 %v813_v3, %v286_v5 }
  0x99   : > { %v297_v7 = vand.u32 2139095040, %v1061_v6  ;;  %v294_v10 = vand.u32 2147483647, %v1061_v6  ;;  %vm296_vm12 = vcmp.lt.s32.totalorder %v1061_v6, 0 }
  0x9b   : > { %v298_v8 = vshrl.u32 %v297_v7, 23  ;;  %v301_v12 = vand.u32 8388607, %v294_v10  ;;  %vm295_vm13 = vcmp.le.f32.partialorder %v294_v10, 0.7853982 }
  0x9d   : > { %v732_v9 = vadd.s32 4294967169, %v298_v8  ;;  %v302_v16 = vor.u32 8388608, %v301_v12 }
  0x9f   : > { %v304_v11 = vadd.s32 1, %v732_v9  ;;  %v1078_v39 = vshll.u32 %v302_v16, 8 }
  0xa1   : > { %vm305_vm0 = vcmp.gt.s32.totalorder %v304_v11, 0  ;;  %v343_v48 = vand.u32 65535, %v1078_v39  ;;  %v344_v49 = vshrl.u32 %v1078_v39, 16 }
  0xa2   : > { %v306_v13 = vsel %vm305_vm0, %v304_v11, 0 }
  0xa3   : > { %v308_v14 = vand.u32 31, %v306_v13  ;;  %v1069_v17 = vshrl.u32 %v306_v13, 5 }
  0xa5   : > { %v1067_v15 = vsub.s32 32, %v308_v14  ;;  %v311_v19 = vshll.u32 %v929_v18, %v308_v14  ;;  %v314_v21 = vshll.u32 %v930_v20, %v308_v14  ;;  %v317_v25 = vshll.u32 %v931_v23, %v308_v14 }
  0xa6   : > { %v320_v28 = vshll.u32 %v932_v26, %v308_v14  ;;  %v323_v31 = vshll.u32 %v933_v29, %v308_v14  ;;  %vm326_vm1 = vcmp.lt.s32.totalorder %v1069_v17, 1  ;;  %vm329_vm2 = vcmp.lt.s32.totalorder %v1069_v17, 4 }
  0xa7   : > { %v312_v22 = vshrl.u32 %v930_v20, %v1067_v15  ;;  %v315_v24 = vshrl.u32 %v931_v23, %v1067_v15  ;;  %v318_v27 = vshrl.u32 %v932_v26, %v1067_v15  ;;  %v321_v30 = vshrl.u32 %v933_v29, %v1067_v15 }
  0xa8   : > { %v324_v33 = vshrl.u32 %v934_v32, %v1067_v15  ;;  %vm328_vm3 = vcmp.lt.s32.totalorder %v1069_v17, 3  ;;  %vm327_vm4 = vcmp.lt.s32.totalorder %v1069_v17, 2  ;;  %v310_v13 = vshrl.u32 %v929_v18, %v1067_v15 }
  0xa9   : > { %v313_v34 = vor.u32 %v312_v22, %v311_v19  ;;  %v316_v35 = vor.u32 %v315_v24, %v314_v21  ;;  %v319_v36 = vor.u32 %v318_v27, %v317_v25  ;;  %v322_v37 = vor.u32 %v321_v30, %v320_v28 }
  0xaa   : > { %v325_v38 = vor.u32 %v324_v33, %v323_v31 }
  0xab   : > { %v334_v40 = vsel %vm326_vm1, %v313_v34, %v316_v35  ;;  %v338_v41 = vsel %vm326_vm1, %v316_v35, %v319_v36  ;;  %v335_v42 = vsel %vm329_vm2, %v322_v37, 920167782  ;;  %v331_v9 = vsel %vm329_vm2, %v319_v36, 2102212464 }
  0xac   : > { %v339_v43 = vsel %vm329_vm2, %v325_v38, 1326507024  ;;  %v336_v44 = vsel %vm328_vm3, %v319_v36, %v335_v42  ;;  %v330_v22 = vsel %vm326_vm1, %v310_v13, %v313_v34  ;;  %v332_v23 = vsel %vm328_vm3, %v316_v35, %v331_v9 }
  0xad   : > { %v340_v45 = vsel %vm328_vm3, %v322_v37, %v339_v43  ;;  %v337_v46 = vsel %vm327_vm4, %v334_v40, %v336_v44  ;;  %v333_v15 = vsel %vm327_vm4, %v330_v22, %v332_v23 }
  0xae   : > { %v341_v47 = vsel %vm327_vm4, %v338_v41, %v340_v45  ;;  %v367_v52 = vand.u32 65535, %v337_v46  ;;  %v368_v53 = vshrl.u32 %v337_v46, 16  ;;  %v387_v31 = vmul.u32 %v1078_v39, %v333_v15 }
  0xaf   : > { %v345_v50 = vand.u32 65535, %v341_v47  ;;  %v346_v51 = vshrl.u32 %v341_v47, 16 }
  0xb0   : > { %v370_v56 = vmul.u32 %v368_v53, %v343_v48  ;;  %v371_v57 = vmul.u32 %v367_v52, %v344_v49  ;;  %v369_v61 = vmul.u32 %v367_v52, %v343_v48  ;;  %v372_v2 = vmul.u32 %v368_v53, %v344_v49 }
  0xb1   : > { %v348_v54 = vmul.u32 %v346_v51, %v343_v48  ;;  %v349_v55 = vmul.u32 %v345_v50, %v344_v49  ;;  %v347_v58 = vmul.u32 %v345_v50, %v343_v48  ;;  %v350_v60 = vmul.u32 %v346_v51, %v344_v49 }
  0xb2   : > { %v373_v62 = vshll.u32 %v370_v56, 16  ;;  %v375_v4 = vshll.u32 %v371_v57, 16  ;;  %v374_v20 = vshrl.u32 %v370_v56, 16  ;;  %v376_v26 = vshrl.u32 %v371_v57, 16 }
  0xb3   : > { %v351_v59 = vshll.u32 %v348_v54, 16  ;;  %v353_v63 = vshll.u32 %v349_v55, 16  ;;  %v352_v14 = vshrl.u32 %v348_v54, 16  ;;  %v354_v24 = vshrl.u32 %v349_v55, 16 }
  0xb4   : > { %vm377_vm6 = vc.u32 %v369_v61, %v373_v62  ;;  %v379_v5 = vadd.s32 %v373_v62, %v369_v61 }
  0xb5   : > { %vm355_vm5 = vc.u32 %v347_v58, %v351_v59  ;;  %v357_v1 = vadd.s32 %v351_v59, %v347_v58  ;;  %v378_v8 = vsel %vm377_vm6, 1, %v928_v0  ;;  %vm437_vm6 = vweird.f32 %v1061_v6 }
  0xb6   : > { %v356_v3 = vsel %vm355_vm5, 1, %v928_v0  ;;  %v380_v12 = vadd.s32 %v378_v8, %v372_v2  ;;  %vm381_vm8 = vc.u32 %v379_v5, %v375_v4  ;;  %v383_v29 = vadd.s32 %v379_v5, %v375_v4 }
  0xb7   : > { %v358_v7 = vadd.s32 %v356_v3, %v350_v60  ;;  %vm359_vm7 = vc.u32 %v357_v1, %v353_v63  ;;  %v382_v19 = vsel %vm381_vm8, 1, %v928_v0  ;;  %v292_v63 = vld [vmem:[%s1169_s3] sm:$0x1] }
  0xb8   : > { %v360_v11 = vsel %vm359_vm7, 1, %v928_v0  ;;  %v384_v21 = vadd.s32 %v382_v19, %v380_v12  ;;  %vm293_vm14 = vcmp.ne.f32.partialorder %v292_v63, 0.0 }
  0xb9   : > { %v362_v16 = vadd.s32 %v360_v11, %v358_v7  ;;  %v603_v11 = vsel %vm293_vm14, 1, %v928_v0 }
  0xba   : > { %v385_v27 = vadd.s32 %v384_v21, %v374_v20  ;;  %v604_v19 = vperm.slane %v603_v11, 0 }
  0xbb   : > { %v363_v25 = vadd.s32 %v362_v16, %v352_v14 }
  0xbc   : > { %v386_v18 = vadd.s32 %v385_v27, %v376_v26  ;;  %vm605_vm5 = vcmp.eq.s32.totalorder %v604_v19, 1 }
  0xbd   : > { %v364_v28 = vadd.s32 %v363_v25, %v354_v24 }
  0xbe   : > { %v390_v30 = vadd.s32 1, %v386_v18 }
  0xbf   : > { %vm389_vm9 = vc.u32 %v364_v28, %v383_v29  ;;  %v388_v17 = vadd.s32 %v383_v29, %v364_v28  ;;  %v607_v28 = vld [vmem:[%s1045_s10] sm:$0xff] }
  0xc0   : > { %v391_v32 = vsel %vm389_vm9, %v390_v30, %v386_v18 }
  0xc1   : > { %v392_v33 = vadd.s32 %v391_v32, %v387_v31 }
  0xc3   : > { %v393_v34 = vadd.s32 536870912, %v392_v33 }
  0xc5   : > { %v394_v36 = vshrl.u32 %v393_v34, 30 }
  0xc7   : > { %v395_v37 = vshll.u32 %v394_v36, 30  ;;  %v418_v56 = vsub.s32 4, %v394_v36 }
  0xc9   : > { %v396_v35 = vsub.s32 %v392_v33, %v395_v37  ;;  %v419_v61 = vsel %vm296_vm12, %v418_v56, %v394_v36 }
  0xca   : > { %v421_v2 = vsel %vm295_vm13, 0, %v419_v61 }
  0xcb   : > { %vm397_vm10 = vcmp.lt.s32.totalorder %v396_v35, 0  ;;  %v398_v38 = vsub.s32 0, %v396_v35  ;;  %v592_v7 = vadd.s32 3, %v421_v2  ;;  %v438_v13 = vand.u32 3, %v421_v2 }
  0xcd   : > { %v399_v40 = vsel %vm397_vm10, %v398_v38, %v396_v35  ;;  %v593_v16 = vand.u32 3, %v592_v7  ;;  %vm439_vm15 = vcmp.lt.s32.totalorder %v438_v13, 2  ;;  %vm440_vm0 = vcmp.eq.s32.totalorder %v438_v13, 0 }
  0xce   : > { %v400_v41 = vclz %v399_v40  ;;  %vm443_vm1 = vcmp.eq.s32.totalorder %v438_v13, 2 }
  0xcf   : > { %vm594_vm2 = vcmp.lt.s32.totalorder %v593_v16, 2  ;;  %vm595_vm3 = vcmp.eq.s32.totalorder %v593_v16, 0  ;;  %vm598_vm4 = vcmp.eq.s32.totalorder %v593_v16, 2 }
  0xd0   : > { %v733_v42 = vadd.s32 4294967294, %v400_v41 }
  0xd2   : > { %vm734_vm11 = vcmp.lt.s32.totalorder %v733_v42, 0 }
  0xd3   : > { %v403_v43 = vsel %vm734_vm11, 0, %v733_v42 }
  0xd4   : > { %v404_v44 = vsub.s32 32, %v403_v43  ;;  %v408_v45 = vsub.s32 4294967266, %v403_v43  ;;  %v405_v46 = vshll.u32 %v396_v35, %v403_v43 }
  0xd6   : > { %v406_v47 = vshrl.u32 %v388_v17, %v404_v44  ;;  %v409_v48 = vadd.s32 127, %v408_v45 }
  0xd8   : > { %v407_v39 = vor.u32 %v406_v47, %v405_v46  ;;  %v410_v49 = vshll.u32 %v409_v48, 23 }
  0xda   : > { %v411_v50 = vor.u32 4788187, %v410_v49  ;;  %v414_v52 = vcvt.s32.f32 %v407_v39 }
  0xdc   : > { %v412_v51 = vand.u32 2147483647, %v411_v50 }
  0xde   : > { %v415_v53 = vmul.f32 %v414_v52, %v412_v51 }
  0xe0   : > { %v416_v54 = vxor.u32 2147483648, %v415_v53 }
  0xe2   : > { %v417_v55 = vsel %vm296_vm12, %v416_v54, %v415_v53 }
  0xe3   : > { %v420_v57 = vsel %vm295_vm13, %v1061_v6, %v417_v55 }
  0xe4   : > { %v422_v58 = vmul.f32 %v420_v57, %v420_v57 }
  0xe6   : > { %v430_v59 = vmul.f32 -0.00019511016, %v422_v58  ;;  %v423_v60 = vmul.f32 -0.001358992, %v422_v58 }
  0xe8   : > { %v431_v62 = vadd.f32 0.008332121, %v430_v59  ;;  %v424_v1 = vadd.f32 0.041655596, %v423_v60 }
  0xea   : > { %v432_v3 = vmul.f32 %v431_v62, %v422_v58  ;;  %v425_v4 = vmul.f32 %v424_v1, %v422_v58 }
  0xec   : > { %v433_v10 = vadd.f32 -0.16666654, %v432_v3  ;;  %v426_v5 = vadd.f32 -0.4999988, %v425_v4 }
  0xee   : > { %v434_v8 = vmul.f32 %v433_v10, %v422_v58  ;;  %v427_v9 = vmul.f32 %v426_v5, %v422_v58 }
  0xf0   : > { %v435_v12 = vadd.f32 1.0, %v434_v8  ;;  %v428_v14 = vadd.f32 1.0, %v427_v9 }
  0xf2   : > { %v436_v20 = vmul.f32 %v435_v12, %v420_v57  ;;  %v444_v21 = vxor.u32 2147483648, %v428_v14 }
  0xf4   : > { %v441_v22 = vxor.u32 2147483648, %v436_v20  ;;  %v445_v23 = vsel %vm443_vm1, %v444_v21, %v436_v20  ;;  %v600_v25 = vsel %vm598_vm4, %v444_v21, %v436_v20 }
  0xf6   : > { %v442_v0 = vsel %vm440_vm0, %v428_v14, %v441_v22  ;;  %v597_v24 = vsel %vm595_vm3, %v428_v14, %v441_v22 }
  0xf7   : > { %v446_v26 = vsel %vm439_vm15, %v442_v0, %v445_v23  ;;  %v601_v27 = vsel %vm594_vm2, %v597_v24, %v600_v25 }
  0xf8   : > { %v447_v29 = vsel %vm437_vm6, nan, %v446_v26  ;;  %v602_v15 = vsel %vm437_vm6, nan, %v601_v27 }
  0xf9   : > { %v606_v18 = vsel %vm605_vm5, %v447_v29, %v602_v15 }
  0xfa   : > { %v608_v30 = vadd.f32 %v607_v28, %v606_v18 }
  0xfc   : > { %609 = vst [vmem:[%s271_s21] sm:$0xff] %v608_v30 }
  0xfd   : > { %871 = shalt.err (!%p868_p13)
}
  0xfe   : > { %744 = dma.vmem_to_hbm [thread:$0]  (%p1016_p9), %s625_s28, 128, %s627_s9, %s611_s11  }
  0xff PF: > { %s638_s25 = sand.u32 1, %s906_s18   ;;  %p751_p0 = pnand %p726_p12, %p1023_p11 }
 0x100   : > { %s639_s16 = scalar_lea.sflag [#allocation4], %s638_s25 }
 0x101   : > { %p752_p1 = pneg %p751_p0 }
 0x103   : > { %901 = dma.done.wait (%p752_p1), %s639_s16, 128  }
 0x104   : > { %903 = vsyncadd (%p752_p1), %s639_s16, 4294967168  ;;  %s21_s23 = sadd.s32 1, %s926_s23   ;;  %s1176_s18 = smov %s910_s19 }
 0x105   : > { %p18_p2 = scmp.ge.s32.totalorder %s21_s23, 4   ;;  %s1177_s19 = smov %s914_s20 }
 0x106   : > { %s1178_s20 = smov %s1021_s7  ;;  %s1179_s21 = smov %s922_s22 }
 0x107   : > { %s1180_s22 = smov %s1182_s26  ;;  %20 = sbr.rel (!%p18_p2) target bundleno = 6 (0x6), region = 88 }
 0x10c   :  { %645 = vsyncpa [#allocation3], 1 }
 0x10d   :  { %647 = vsyncpa [#allocation3 + $0x1], 1 }
 0x10e   :  { %648 = vsyncpa [#allocation4], 1 }
 0x10f   :  { %650 = vsyncpa [#allocation4 + $0x1], 1 }

</bundles_post_ra>
